<compile_context>
chip_gen: v5e
topology: v5e:2x2
jax: 0.10.0
libtpu: 0.0.40
codegen_flags: <defaults>
</compile_context>

<pallas_src>
import math
import functools

import jax
import jax.numpy as jnp
from jax.experimental import pallas as pl
from jax.experimental.pallas import tpu as pltpu

# These were referenced but undefined in the PyTorch snippet; fixed here.
DROPOUT_P = 0.1                       # torch.nn.Dropout(dropout_p)
# inv_scale_factor := sqrt(D) (standard attention scaling), set per-call below.


# ----------------------------------------------------------------------------
# Kernels
# ----------------------------------------------------------------------------
def _finalize(out_f32, o_ref):
    # o_ref is either (tbh, S, D) or the lane-dense merged (1, tbh, S*D) form;
    # the reshape is a no-op in the first case.
    o_ref[...] = out_f32.reshape(o_ref.shape).astype(o_ref.dtype)


def _softmax_from_scores(s, inv_extra, approx):
    m = jnp.max(s, axis=-1, keepdims=True)
    e = jnp.exp(s - m)
    denom = jnp.sum(e, axis=-1, keepdims=True)
    if approx:
        inv = pl.reciprocal(denom, approx=True)   # EUP slot, ~free
    else:
        inv = 1.0 / denom                          # exact (validation path)
    if inv_extra != 1.0:
        # inv_keep folded into the per-row (tbh,S,1) vector, not the (S,S) tile.
        inv = inv * jnp.float32(inv_extra)
    return e * inv


def _attn_kernel(q_ref, k_ref, v_ref, o_ref, *, scale, mxu_dtype, approx_recip):
    """No-dropout path. q/k/v refs are (tbh, S, D)."""
    q = (q_ref[...] * jnp.float32(scale)).astype(mxu_dtype)  # scale folded into q
    k = k_ref[...].astype(mxu_dtype)
    v = v_ref[...].astype(mxu_dtype)

    # (tbh, S, S) scores; contraction on D (NT matmul on the MXU, no k.T relayout).
    s = jnp.einsum("bqd,bkd->bqk", q, k, preferred_element_type=jnp.float32)
    p = _softmax_from_scores(s, 1.0, approx_recip)

    out = jnp.einsum("bqk,bkd->bqd", p.astype(mxu_dtype), v,
                     preferred_element_type=jnp.float32)
    _finalize(out, o_ref)


def _attn_dropout_kernel(q_ref, k_ref, v_ref, bits_ref, o_ref, *,
                         scale, threshold, inv_keep, mxu_dtype, approx_recip):
    """Dropout path with externally generated uint8 random bits (tbh, S, S)."""
    q = (q_ref[...] * jnp.float32(scale)).astype(mxu_dtype)
    k = k_ref[...].astype(mxu_dtype)
    v = v_ref[...].astype(mxu_dtype)

    s = jnp.einsum("bqd,bkd->bqk", q, k, preferred_element_type=jnp.float32)
    p = _softmax_from_scores(s, inv_keep, approx_recip)

    # Inverted dropout on post-softmax probabilities (PyTorch semantics):
    # keep with prob ~(1 - dropout_p) (quantized to 1/256), kept values already
    # scaled by 1/(1 - dropout_p) via the folded reciprocal above.
    keep = bits_ref[...] >= jnp.uint8(threshold)
    p = jnp.where(keep, p, jnp.float32(0.0))

    out = jnp.einsum("bqk,bkd->bqd", p.astype(mxu_dtype), v,
                     preferred_element_type=jnp.float32)
    _finalize(out, o_ref)


def _attn_dropout_hwprng_kernel(seed_ref, q_ref, k_ref, v_ref, o_ref, *,
                                scale, threshold32, inv_keep, mxu_dtype,
                                approx_recip):
    """Dropout path using the in-kernel hardware PRNG (no bits tensor from HBM).

    Not the default: pltpu.prng_* has no CPU-interpret lowering. Enable with
    use_hw_prng=True when running compiled on real TPU hardware.
    """
    pltpu.prng_seed(seed_ref[0] + pl.program_id(0))

    q = (q_ref[...] * jnp.float32(scale)).astype(mxu_dtype)
    k = k_ref[...].astype(mxu_dtype)
    v = v_ref[...].astype(mxu_dtype)

    s = jnp.einsum("bqd,bkd->bqk", q, k, preferred_element_type=jnp.float32)
    p = _softmax_from_scores(s, inv_keep, approx_recip)

    bits = pltpu.prng_random_bits(s.shape)
    keep = bits >= jnp.uint32(threshold32)
    p = jnp.where(keep, p, jnp.float32(0.0))

    out = jnp.einsum("bqk,bkd->bqd", p.astype(mxu_dtype), v,
                     preferred_element_type=jnp.float32)
    _finalize(out, o_ref)


# ----------------------------------------------------------------------------
# Tiling helpers
# ----------------------------------------------------------------------------
def _vmem_capacity_bytes():
    try:
        return int(pltpu.get_tpu_info().vmem_capacity_bytes)
    except Exception:
        return 64 * 1024 * 1024  # smallest per-core VMEM of the target gens (v7x)


def _estimate_vmem_bytes(tbh, S, D, in_bytes, out_bytes, bits_bytes):
    qkv = 3 * 2 * tbh * S * D * in_bytes     # double-buffered q/k/v tiles
    out = 2 * tbh * S * D * out_bytes        # double-buffered output tile
    bits = 2 * tbh * S * S * bits_bytes      # double-buffered dropout-bits tile
    temps = 3 * tbh * S * S * 4              # s / e / p f32 temporaries
    return qkv + out + bits + temps


def _pick_tbh(BH, S, D, in_bytes, out_bytes, bits_bytes, vmem_budget):
    """Largest head-batch block that divides BH, leaves >=2 grid steps (so the
    'parallel' grid axis can span both v7x TensorCores) and fits VMEM."""
    cap = max(BH // 2, 1)
    for tbh in (16, 8, 4, 2, 1):
        if BH % tbh or tbh > cap:
            continue
        if _estimate_vmem_bytes(tbh, S, D, in_bytes, out_bytes, bits_bytes) <= vmem_budget:
            return tbh
    return 1


# ----------------------------------------------------------------------------
# Wrapper
# ----------------------------------------------------------------------------
def sdpa_pallas(query, key, value, *, dropout_p=DROPOUT_P, rng_key=None,
                mxu_dtype=jnp.bfloat16, use_hw_prng=False, prng_seed=0):
    """query/key/value: [B, H, S, D]. Returns [B, H, S, D].

    Implements: softmax(q @ k^T / sqrt(D)) -> dropout -> @ v   (PyTorch Model).
    """
    B, H, S, D = query.shape
    BH = B * H
    inv_scale_factor = math.sqrt(D)       # the module's undefined inv_scale_factor
    scale = 1.0 / inv_scale_factor        # folded into q inside the kernel

    q = query.reshape(BH, S, D)
    k = key.reshape(BH, S, D)
    v = value.reshape(BH, S, D)

    in_bytes = q.dtype.itemsize
    out_bytes = query.dtype.itemsize
    has_ext_bits = (dropout_p > 0.0) and (not use_hw_prng)
    bits_bytes = 1 if has_ext_bits else 0

    vmem_cap = _vmem_capacity_bytes()
    tbh = _pick_tbh(BH, S, D, in_bytes, out_bytes, bits_bytes,
                    int(0.7 * vmem_cap))
    grid = (BH // tbh,)

    est = _estimate_vmem_bytes(tbh, S, D, in_bytes, out_bytes, bits_bytes)
    vmem_limit = max(32 * 1024 * 1024, min(int(0.9 * vmem_cap), 2 * est))

    approx_recip = (mxu_dtype != jnp.float32)

    qkv_spec = pl.BlockSpec((tbh, S, D), lambda i: (i, 0, 0))
    in_specs = [qkv_spec, qkv_spec, qkv_spec]

    # Lane-dense output: when D doesn't fill the 128-lane vreg width, merge the
    # (S, D) output dims into one S*D lane axis.  The 3-D (n_blocks, tbh, S*D)
    # layout keeps every block dim either full-extent or (8,128)-aligned.
    merge_out = (D % 128 != 0) and ((S * D) % 128 == 0)
    if merge_out:
        out_shape = jax.ShapeDtypeStruct((BH // tbh, tbh, S * D), query.dtype)
        out_spec = pl.BlockSpec((1, tbh, S * D), lambda i: (i, 0, 0))
    else:
        out_shape = jax.ShapeDtypeStruct((BH, S, D), query.dtype)
        out_spec = pl.BlockSpec((tbh, S, D), lambda i: (i, 0, 0))

    if dropout_p <= 0.0:
        kernel = functools.partial(_attn_kernel, scale=scale,
                                   mxu_dtype=mxu_dtype, approx_recip=approx_recip)
        args = (q, k, v)
    elif use_hw_prng:
        threshold32 = min(int(round(dropout_p * (1 << 32))), (1 << 32) - 1)
        kernel = functools.partial(
            _attn_dropout_hwprng_kernel, scale=scale, threshold32=threshold32,
            inv_keep=1.0 / (1.0 - dropout_p), mxu_dtype=mxu_dtype,
            approx_recip=approx_recip)
        seed = jnp.asarray([prng_seed], dtype=jnp.int32)
        in_specs = [pl.BlockSpec(memory_space=pltpu.MemorySpace.SMEM)] + in_specs
        args = (seed, q, k, v)
    else:
        if rng_key is None:
            raise ValueError("rng_key is required when dropout_p > 0 "
                             "(avoids silently-deterministic dropout).")
        # uint8 bits: 4x less HBM traffic / VMEM than uint32; keep-probability is
        # quantized to 1/256 (keep = (256 - threshold)/256 ~= 1 - dropout_p).
        bits = jax.random.bits(rng_key, (BH, S, S), dtype=jnp.uint8)
        threshold = min(int(round(dropout_p * 256)), 255)
        kernel = functools.partial(
            _attn_dropout_kernel, scale=scale, threshold=threshold,
            inv_keep=1.0 / (1.0 - dropout_p), mxu_dtype=mxu_dtype,
            approx_recip=approx_recip)
        in_specs = in_specs + [pl.BlockSpec((tbh, S, S), lambda i: (i, 0, 0))]
        args = (q, k, v, bits)

    out = pl.pallas_call(
        kernel,
        out_shape=out_shape,
        grid=grid,
        in_specs=in_specs,
        out_specs=out_spec,
        compiler_params=pltpu.CompilerParams(
            dimension_semantics=("parallel",),   # independent steps -> 2 TCs on v7x
            vmem_limit_bytes=vmem_limit,
        ),
    )(*args)

    return out.reshape(B, H, S, D)


# ----------------------------------------------------------------------------
# Reference + test
# ----------------------------------------------------------------------------
def _sdpa_ref_no_dropout(query, key, value):
    D = query.shape[-1]
    qk = jnp.einsum("bhqd,bhkd->bhqk", query, key) / math.sqrt(D)
    p = jax.nn.softmax(qk, axis=-1)
    return jnp.einsum("bhqk,bhkd->bhqd", p, value)


if __name__ == "__main__":
    B, H, S, D = 2, 4, 8, 32
    rng = jax.random.PRNGKey(0)
    kq, kk, kv, kdrop = jax.random.split(rng, 4)
    query = jax.random.normal(kq, (B, H, S, D), dtype=jnp.float32)
    key_in = jax.random.normal(kk, (B, H, S, D), dtype=jnp.float32)
    value = jax.random.normal(kv, (B, H, S, D), dtype=jnp.float32)

    ref = _sdpa_ref_no_dropout(query, key_in, value)

    # 1) Bit-accurate validation path: f32 MXU operands, exact reciprocal.
    out_f32 = sdpa_pallas(query, key_in, value, dropout_p=0.0,
                          mxu_dtype=jnp.float32)
    assert jnp.allclose(out_f32, ref, atol=1e-4, rtol=1e-4), \
        "f32 path mismatch vs reference"

    # 2) Default fast path: bf16 MXU operands + approx reciprocal (loose tol).
    out_fast = sdpa_pallas(query, key_in, value, dropout_p=0.0)
    assert jnp.allclose(out_fast, ref, atol=5e-2, rtol=5e-2), \
        "bf16 path mismatch vs reference"

    # 3) Full forward (matmul -> scale -> softmax -> dropout -> matmul).
    out = sdpa_pallas(query, key_in, value, dropout_p=DROPOUT_P, rng_key=kdrop)
    jax.block_until_ready(out)
    assert out.shape == (B, H, S, D)
    assert bool(jnp.all(jnp.isfinite(out)))
    print("KERNEL_OK")
</pallas_src>

<mosaic_0001>
module attributes {stable_mosaic.version = 11 : i64} {
  func.func @_attn_kernel(%arg0: i32, %arg1: memref<4x8x32xf32, #tpu.memory_space<vmem>>, %arg2: memref<4x8x32xf32, #tpu.memory_space<vmem>>, %arg3: memref<4x8x32xf32, #tpu.memory_space<vmem>>, %arg4: memref<1x4x256xf32, #tpu.memory_space<vmem>>) attributes {dimension_semantics = [#tpu.dimension_semantics<parallel>], iteration_bounds = array<i64: 2>, scalar_prefetch = 0 : i64, scratch_operands = 0 : i64, tpu.core_type = #tpu.core_type<tc>, window_params = [{transform_indices = @transform_0, window_bounds = array<i64: 4, 8, 32>}, {transform_indices = @transform_1, window_bounds = array<i64: 4, 8, 32>}, {transform_indices = @transform_2, window_bounds = array<i64: 4, 8, 32>}, {transform_indices = @transform_3, window_bounds = array<i64: 1, 4, 256>}]} {
    %c0 = arith.constant 0 : index
    %c0_0 = arith.constant 0 : index
    %c0_1 = arith.constant 0 : index
    %0 = vector.load %arg1[%c0, %c0_0, %c0_1] : memref<4x8x32xf32, #tpu.memory_space<vmem>>, vector<4x8x32xf32>
    %cst = arith.constant 0.176776692 : f32
    %1 = vector.broadcast %cst : f32 to vector<4x8x32xf32>
    %2 = arith.mulf %0, %1 : vector<4x8x32xf32>
    %c0_2 = arith.constant 0 : index
    %c0_3 = arith.constant 0 : index
    %c0_4 = arith.constant 0 : index
    %3 = vector.load %arg2[%c0_2, %c0_3, %c0_4] : memref<4x8x32xf32, #tpu.memory_space<vmem>>, vector<4x8x32xf32>
    %c0_5 = arith.constant 0 : index
    %c0_6 = arith.constant 0 : index
    %c0_7 = arith.constant 0 : index
    %4 = vector.load %arg3[%c0_5, %c0_6, %c0_7] : memref<4x8x32xf32, #tpu.memory_space<vmem>>, vector<4x8x32xf32>
    "tpu.trace_start"() <{level = 10 : i32, message = "bqd,bkd->bqk"}> : () -> ()
    %cst_8 = arith.constant dense<0.000000e+00> : vector<4x8x8xf32>
    %5 = tpu.matmul %2, %3, %cst_8 {dimension_numbers = #tpu.dot_dimension_numbers<[2], [2], [1], [1], [0, 0, 0, 1, 1, 1], [0], [0]>} : vector<4x8x32xf32>, vector<4x8x32xf32>, vector<4x8x8xf32> -> vector<4x8x8xf32>
    "tpu.trace_stop"() : () -> ()
    %cst_9 = arith.constant dense<0xFF800000> : vector<4x8xf32>
    %6 = vector.multi_reduction <maximumf>, %5, %cst_9 [2] : vector<4x8x8xf32> to vector<4x8xf32>
    %7 = vector.shape_cast %6 : vector<4x8xf32> to vector<4x8x1xf32>
    %8 = vector.broadcast %7 : vector<4x8x1xf32> to vector<4x8x8xf32>
    %9 = arith.subf %5, %8 : vector<4x8x8xf32>
    %10 = math.exp %9 : vector<4x8x8xf32>
    %cst_10 = arith.constant dense<0.000000e+00> : vector<4x8xf32>
    %11 = vector.multi_reduction <add>, %10, %cst_10 [2] : vector<4x8x8xf32> to vector<4x8xf32>
    %12 = vector.shape_cast %11 : vector<4x8xf32> to vector<4x8x1xf32>
    %cst_11 = arith.constant 1.000000e+00 : f32
    %13 = vector.broadcast %cst_11 : f32 to vector<4x8x1xf32>
    %14 = arith.divf %13, %12 : vector<4x8x1xf32>
    %15 = vector.broadcast %14 : vector<4x8x1xf32> to vector<4x8x8xf32>
    %16 = arith.mulf %10, %15 : vector<4x8x8xf32>
    "tpu.trace_start"() <{level = 10 : i32, message = "bqk,bkd->bqd"}> : () -> ()
    %cst_12 = arith.constant dense<0.000000e+00> : vector<4x8x32xf32>
    %17 = tpu.matmul %16, %4, %cst_12 {dimension_numbers = #tpu.dot_dimension_numbers<[2], [1], [1], [2], [0, 0, 0, 1, 1, 2], [0], [0]>} : vector<4x8x8xf32>, vector<4x8x32xf32>, vector<4x8x32xf32> -> vector<4x8x32xf32>
    "tpu.trace_stop"() : () -> ()
    %18 = vector.shape_cast %17 : vector<4x8x32xf32> to vector<1x4x256xf32>
    %c0_13 = arith.constant 0 : index
    %c0_14 = arith.constant 0 : index
    %c0_15 = arith.constant 0 : index
    %19 = vector.load %arg4[%c0_13, %c0_14, %c0_15] : memref<1x4x256xf32, #tpu.memory_space<vmem>>, vector<1x4x256xf32>
    tpu.vector_store %arg4[%c0_13, %c0_14, %c0_15], %18 {strides = array<i32>} : memref<1x4x256xf32, #tpu.memory_space<vmem>>, vector<1x4x256xf32>,
    return
  }
  func.func @transform_0(%arg0: i32) -> (i32, i32, i32) {
    %c0_i32 = arith.constant 0 : i32
    %c0_i32_0 = arith.constant 0 : i32
    %c0_i32_1 = arith.constant 0 : i32
    return %arg0, %c0_i32, %c0_i32_0 : i32, i32, i32
  }
  func.func @transform_1(%arg0: i32) -> (i32, i32, i32) {
    %c0_i32 = arith.constant 0 : i32
    %c0_i32_0 = arith.constant 0 : i32
    %c0_i32_1 = arith.constant 0 : i32
    return %arg0, %c0_i32, %c0_i32_0 : i32, i32, i32
  }
  func.func @transform_2(%arg0: i32) -> (i32, i32, i32) {
    %c0_i32 = arith.constant 0 : i32
    %c0_i32_0 = arith.constant 0 : i32
    %c0_i32_1 = arith.constant 0 : i32
    return %arg0, %c0_i32, %c0_i32_0 : i32, i32, i32
  }
  func.func @transform_3(%arg0: i32) -> (i32, i32, i32) {
    %c0_i32 = arith.constant 0 : i32
    %c0_i32_0 = arith.constant 0 : i32
    %c0_i32_1 = arith.constant 0 : i32
    return %arg0, %c0_i32, %c0_i32_0 : i32, i32, i32
  }
}

</mosaic_0001>

<bundles_post_ra>
// kernel: tpu_custom_call.1
= control target key start
LH: loop header
LB: loop body
LE: loop exit
PB: predicated region body
PF: predicated region fallthrough
CT: control target
= control target key end

     0   :  { %s1364_s0 = inlined_call_operand.hbm [shape: f32[8,8,32], index: 0, kind: input, shape index: {}]   ;;  %s1365_s1 = inlined_call_operand.hbm [shape: f32[8,8,32], index: 1, kind: input, shape index: {}]   ;;  %s1366_s2 = inlined_call_operand.hbm [shape: f32[8,8,32], index: 2, kind: input, shape index: {}]   ;;  %s1367_s3 = inlined_call_operand.hbm [shape: f32[2,4,256], index: 3, kind: output, shape index: {}]  }
   0x1   :  { %1370 = sst [smem:[#allocation13_spill]] %s1364_s0 }
   0x2   :  { %1371 = sst [smem:[#allocation14_spill]] %s1365_s1 }
   0x3   :  { %8 = vsyncpa [#allocation3], 0 }
   0x4   :  { %10 = vsyncpa [#allocation3 + $0x1], 0 }
   0x5   :  { %11 = vsyncpa [#allocation6], 0 }
   0x6   :  { %13 = vsyncpa [#allocation6 + $0x1], 0 }
   0x7   :  { %14 = vsyncpa [#allocation4], 0 }
   0x8   :  { %16 = vsyncpa [#allocation4 + $0x1], 0  ;;  %s1121_s12 = smov 0   ;;  %s1123_s13 = smov 0  }
   0x9   :  { %s1125_s14 = smov 0   ;;  %s1127_s15 = smov 0  }
   0xa LB: > { %s1142_s16 = sadd.s32 4294967295, %s1092_s15   ;;  %s815_s17 = sadd.s32 4294967294, %s1092_s15   ;;  %s1092_s15 = sphi %s1127_s15, %s1385_s15   ;;  %s1088_s14 = sphi %s1125_s14, %s1384_s14   ;;  %s1084_s13 = sphi %s1123_s13, %s1383_s13   ;;  %s1080_s12 = sphi %s1121_s12, %s1382_s12  }
   0xb   : > { %s1146_s18 = sadd.s32 1, %s1092_s15   ;;  %s29_s19 = sadd.s32 1, %s1088_s14 }
   0xc   : > { %s26_s20 = ssub.s32 %s1092_s15, %s1146_s18  ;;  %p36_p0 = scmp.ne.s32.totalorder %s1088_s14, %s1084_s13 }
   0xd   : > { %p27_p1 = scmp.eq.s32.totalorder %s26_s20, 0  ;;  %p37_p2 = scmp.eq.s32.totalorder %s1092_s15, 0 }
   0xe   : > { %p42_p3 = scmp.ne.s32.totalorder %s1084_s13, %s1080_s12  ;;  %p43_p4 = scmp.eq.s32.totalorder %s1142_s16, 0 }
   0xf   : > { %s1158_s21 = scalar_select %p27_p1, %s1088_s14, %s29_s19  }
  0x10   : > { %p38_p5 = por %p37_p2, %p36_p0  ;;  %p1160_p6 = por %p43_p4, %p42_p3 }
  0x11   : > { %1372 = sst [smem:[#allocation12_spill]] %s1158_s21  ;;  %p118_p7 = scmp.eq.s32.totalorder %s1142_s16, 1 }
  0x12   : > { %p124_p8 = scmp.eq.s32.totalorder %s815_s17, 1  ;;  %p817_p9 = scmp.ge.s32.totalorder %s1092_s15, 2 }
  0x13   : > { %p875_p10 = scmp.lt.s32.totalorder %s1092_s15, 2  ;;  %p1167_p11 = por %p118_p7, %p36_p0 }
  0x14   : > { %p1171_p12 = por %p124_p8, %p42_p3  ;;  %s144_s25 = sand.u32 1, %s1088_s14  }
  0x15   : > { %s1177_s26 = sshll.u32 %s1092_s15, 5  ;;  %s1181_s27 = sshll.u32 %s144_s25, 5 }
  0x16   : > { %p1183_p13 = pnand %p875_p10, %p38_p5  ;;  %s166_s29 = sand.u32 1, %s1092_s15  }
  0x17   : > { %s1377_s1 = sld [smem:[#allocation14_spill]]  ;;  %s170_s6 = scalar_lea.vmem [#allocation5], %s1181_s27 }
  0x18   : > { %s178_s7 = sshll.u32 %s170_s6, 4  ;;  %p827_p0 = scmp.ge.s32.totalorder %s1092_s15, 1  ;;  %s179_s7 = int_to_ptr.vmem [resolvable:$true] %s178_s7 }
  0x19   : > { %s1194_s9 = scalar_lea.sflag [#allocation6], %s166_s29  ;;  %p936_p2 = pneg %p1183_p13 }
  0x1d   : > { %s175_s5 = scalar_lea.hbm %s1377_s1, %s1177_s26  ;;  %s939_s20 = scalar_lea.hbm %s1377_s1, 64 }
  0x1e   : > { %s176_s8 = sshll.u32 %s175_s5, 4  ;;  %s177_s8 = int_to_ptr.hbm [resolvable:$true] %s176_s8 }
  0x1f   : > { %s932_s10 = sshra.s32 %s177_s8, 4  ;;  %s933_s10 = int_to_ptr.hbm [resolvable:$true] %s932_s10 }
  0x20   : > { %s934_s11 = scalar_lea.hbm %s933_s10, 32  ;;  %p940_p5 = scmp.lt.s32.totalorder %s933_s10, %s1377_s1 }
  0x21   : > { %p935_p1 = scmp.ne.s32.totalorder %s933_s10, %s934_s11  ;;  %p941_p7 = scmp.lt.s32.totalorder %s939_s20, %s934_s11 }
  0x23   : > { %p937_p3 = pnand %p936_p2, %p935_p1  ;;  %p942_p8 = por %p941_p7, %p940_p5 }
  0x25   : > { %p938_p4 = pneg %p937_p3 }
  0x27   : > { %p943_p10 = pnand %p942_p8, %p938_p4 }
  0x29   : > { %946 = shalt.err (!%p943_p10)
}
  0x2a   : > { %s1368_s29 = smov 128   ;;  %s1095_s5 = smov 8  }
  0x2b   : > { %867 = dma.hbm_to_vmem [thread:$0]  (!%p1183_p13), %s177_s8, 512, %s179_s7, %s1194_s9, %s1368_s29, %s1368_s29, %s1095_s5  }
  0x2c   : > { %p208_p1 = scmp.lt.s32.totalorder %s1092_s15, 3  ;;  %s1378_s0 = sld [smem:[#allocation13_spill]] }
  0x2d   : > { %s148_s20 = scalar_lea.vmem [#allocation2], %s1181_s27  ;;  %s145_s4 = scalar_lea.sflag [#allocation3], %s144_s25 }
  0x2e   : > { %p1220_p3 = pnand %p827_p0, %p208_p1  ;;  %s156_s30 = sshll.u32 %s148_s20, 4  ;;  %s157_s30 = int_to_ptr.vmem [resolvable:$true] %s156_s30 }
  0x32   : > { %s153_s11 = scalar_lea.hbm %s1378_s0, %s1177_s26  ;;  %s969_s10 = scalar_lea.hbm %s1378_s0, 64 }
  0x33   : > { %s154_s19 = sshll.u32 %s153_s11, 4  ;;  %s155_s19 = int_to_ptr.hbm [resolvable:$true] %s154_s19 }
  0x34   : > { %s962_s1 = sshra.s32 %s155_s19, 4  ;;  %s963_s1 = int_to_ptr.hbm [resolvable:$true] %s962_s1 }
  0x35   : > { %s964_s7 = scalar_lea.hbm %s963_s1, 32  ;;  %p970_p0 = scmp.lt.s32.totalorder %s963_s1, %s1378_s0 }
  0x36   : > { %p965_p4 = scmp.ne.s32.totalorder %s963_s1, %s964_s7  ;;  %p971_p8 = scmp.lt.s32.totalorder %s969_s10, %s964_s7 }
  0x38   : > { %p967_p5 = pnand %p965_p4, %p936_p2  ;;  %p972_p10 = por %p971_p8, %p970_p0 }
  0x3a   : > { %p968_p7 = pneg %p967_p5 }
  0x3c   : > { %p973_p1 = pnand %p972_p10, %p968_p7 }
  0x3e   : > { %976 = shalt.err (!%p973_p1)
}
  0x3f   : > { %s1380_s25 = smov 128   ;;  %s197_s6 = scalar_lea.hbm %s1366_s2, %s1177_s26 }
  0x40   : > { %864 = dma.hbm_to_vmem [thread:$0]  (!%p1183_p13), %s155_s19, 512, %s157_s30, %s145_s4, %s1380_s25, %s1380_s25, %s1095_s5  }
  0x41   : > { %s192_s21 = scalar_lea.vmem [#allocation7], %s1181_s27  ;;  %s198_s1 = sshll.u32 %s197_s6, 4  ;;  %s199_s1 = int_to_ptr.hbm [resolvable:$true] %s198_s1 }
  0x42   : > { %s200_s29 = sshll.u32 %s192_s21, 4  ;;  %s992_s7 = sshra.s32 %s199_s1, 4  ;;  %s201_s29 = int_to_ptr.vmem [resolvable:$true] %s200_s29  ;;  %s993_s7 = int_to_ptr.hbm [resolvable:$true] %s992_s7 }
  0x43   : > { %s994_s10 = scalar_lea.hbm %s993_s7, 32  ;;  %s999_s19 = scalar_lea.hbm %s1366_s2, 64 }
  0x44   : > { %p995_p4 = scmp.ne.s32.totalorder %s993_s7, %s994_s10  ;;  %p1000_p0 = scmp.lt.s32.totalorder %s993_s7, %s1366_s2 }
  0x45   : > { %p1001_p8 = scmp.lt.s32.totalorder %s999_s19, %s994_s10 }
  0x46   : > { %p997_p5 = pnand %p995_p4, %p936_p2 }
  0x47   : > { %p1002_p10 = por %p1001_p8, %p1000_p0 }
  0x48   : > { %p998_p7 = pneg %p997_p5 }
  0x4a   : > { %p1003_p1 = pnand %p1002_p10, %p998_p7 }
  0x4c   : > { %1006 = shalt.err (!%p1003_p1)
}
  0x4d   : > { %870 = dma.hbm_to_vmem [thread:$0]  (!%p1183_p13), %s199_s1, 512, %s201_s29, %s1194_s9, %s1380_s25, %s1380_s25, %s1095_s5  }
  0x4e   : > { %212 = sbr.rel (%p1220_p3) target bundleno = 764 (0x2fc), region = 32  ;;  %s1264_s0 = sand.u32 (!%p1220_p3), 1, %s1084_s13  }
  0x4f   : > { %s1267_s21 = sshll.u32 (!%p1220_p3), %s1264_s0, 5  ;;  %s215_s26 = scalar_lea.sflag (!%p1220_p3), [#allocation3], %s1264_s0 }
  0x50   : > { %s218_s27 = scalar_lea.vmem (!%p1220_p3), [#allocation2], %s1267_s21 }
  0x53   : > { %1067 = dma.done.wait (%p1160_p6), %s215_s26, 512  }
  0x54   : > { %1069 = vsyncadd (%p1160_p6), %s215_s26, 4294966784  ;;  %s224_s28 = sand.u32 1, %s1142_s16   ;;  %s228_s5 = scalar_lea.vmem [#allocation5], %s1267_s21 }
  0x55   : > { %s225_s9 = scalar_lea.sflag [#allocation6], %s224_s28 }
  0x56   : > { %1071 = dma.done.wait (%p1160_p6), %s225_s9, 1024  }
  0x57   : > { %1073 = vsyncadd (%p1160_p6), %s225_s9, 4294966272  ;;  %vm291_vm0 = vcmask 261120   ;;  %v284_v0 = vld [vmem:[%s228_s5 + $0x8] sm:$0xff]  ;;  %v286_v1 = vld [vmem:[%s228_s5 + $0x18] sm:$0xff]  ;;  %vm396_vm1 = vcmask 64512   ;;  %s238_s22 = scalar_lea.vmem [#allocation7], %s1267_s21 }
  0x58   : > { %v276_v2 = vld [vmem:[%s218_s27 + $0x8] sm:$0xff]  ;;  %834 = vmatpush.xpose.msk.msra.mxu1 %vm291_vm0, %v284_v0  ;;  %838 = vmatpush.xpose.msk.msra.mxu3 %vm291_vm0, %v286_v1  ;;  %v278_v4 = vld [vmem:[%s218_s27 + $0x18] sm:$0xff]  ;;  %v283_v5 = vld [vmem:[%s228_s5] sm:$0xff]  ;;  %s1098_s17 = smov 64   ;;  %s1099_s25 = smov 32  }
  0x59   : > { %v280_v3 = vmul.f32 0.17677669, %v276_v2  ;;  %v285_v6 = vld [vmem:[%s228_s5 + $0x10] sm:$0xff]  ;;  %v282_v7 = vmul.f32 0.17677669, %v278_v4  ;;  %832 = vmatpush.xpose.msk.msra.mxu0 %vm291_vm0, %v283_v5  ;;  %v275_v8 = vld [vmem:[%s218_s27] sm:$0xff] }
  0x5a   : > { %836 = vmatpush.xpose.msk.msra.mxu2 %vm291_vm0, %v285_v6  ;;  %v277_v9 = vld [vmem:[%s218_s27 + $0x10] sm:$0xff]  ;;  %v279_v10 = vmul.f32 0.17677669, %v275_v8  ;;  %v288_v40 = vld [vmem:[%s238_s22 + $0x8] sm:$0xff]  ;;  %v290_v41 = vld [vmem:[%s238_s22 + $0x18] sm:$0xff]  ;;  %s1100_s20 = smov 96  }
  0x5b   : > { %v281_v11 = vmul.f32 0.17677669, %v277_v9  ;;  %835 = vmatmul.msk.f32.vlgmr.msra.gmra.mxu1 %vm291_vm0, %v280_v3  ;;  %839 = vmatmul.msk.f32.vlgmr.msra.gmra.mxu3 %vm291_vm0, %v282_v7  ;;  %v287_v42 = vld [vmem:[%s238_s22] sm:$0xff]  ;;  %v289_v43 = vld [vmem:[%s238_s22 + $0x10] sm:$0xff]  ;;  %s831_s8 = sshll.u32 %s1264_s0, 3  ;;  %s852_s6 = sshll.u32 %s1142_s16, 3 }
  0x5c   : > { %833 = vmatmul.msk.f32.vlgmr.msra.gmra.mxu0 %vm291_vm0, %v279_v10  ;;  %538 = vmatpush.msrb.mxu1 %v288_v40  ;;  %s697_s7 = scalar_lea.hbm %s1367_s3, %s852_s6  ;;  %s271_s10 = scalar_lea.vmem [#allocation8], %s831_s8 }
  0x5d   : > { %837 = vmatmul.msk.f32.vlgmr.msra.gmra.mxu2 %vm291_vm0, %v281_v11  ;;  %584 = vmatpush.msrb.mxu3 %v290_v41  ;;  %s699_s11 = sshll.u32 %s271_s10, 4  ;;  %s701_s19 = sshll.u32 %s697_s7, 4  ;;  %s700_s11 = int_to_ptr.vmem [resolvable:$true] %s699_s11  ;;  %s702_s19 = int_to_ptr.hbm [resolvable:$true] %s701_s19 }
  0x5e   : > { %515 = vmatpush.msrb.mxu0 %v287_v42  ;;  %561 = vmatpush.msrb.mxu2 %v289_v43  ;;  %s686_s16 = scalar_lea.sflag [#allocation4], %s1264_s0  ;;  %s1036_s30 = sshra.s32 %s702_s19, 4  ;;  %s1037_s30 = int_to_ptr.hbm [resolvable:$true] %s1036_s30 }
  0x5f   : > { %s1038_s4 = scalar_lea.hbm %s1037_s30, 8  ;;  %s1042_s27 = scalar_lea.hbm %s1367_s3, 16 }
  0x60   : > { %p1039_p6 = scmp.ne.s32.totalorder %s1037_s30, %s1038_s4  ;;  %p1043_p3 = scmp.lt.s32.totalorder %s1037_s30, %s1367_s3 }
  0x61   : > { %p1044_p4 = scmp.lt.s32.totalorder %s1042_s27, %s1038_s4 }
  0x62   : > { %p1040_p13 = pnand %p1039_p6, %p1167_p11 }
  0x63   : > { %p1045_p5 = por %p1044_p4, %p1043_p3 }
  0x64   : > { %p1041_p2 = pneg %p1040_p13 }
  0x66   : > { %p1046_p7 = pnand %p1045_p5, %p1041_p2 }
  0xd8   : > { %v341_v12 = vpop.f32.mrf.mxu1 }
  0xd9   : > { %v400_v13 = vsel %vm396_vm1, %v341_v12, -inf  ;;  %v315_v14 = vpop.f32.mrf.mxu0 }
  0xda   : > { %401 = vmax.xlane.f32.xlu1 %v400_v13  ;;  %v397_v17 = vsel %vm396_vm1, %v315_v14, -inf }
  0xde   : > { %v393_v15 = vpop.f32.mrf.mxu3 }
  0xdf   : > { %v406_v16 = vsel %vm396_vm1, %v393_v15, -inf }
  0xe0   : > { %407 = vmax.xlane.f32.xlu0 %v406_v16  ;;  %v367_v18 = vpop.f32.mrf.mxu2 }
  0xe1   : > { %v403_v19 = vsel %vm396_vm1, %v367_v18, -inf }
  0xe2   : > { %398 = vmax.xlane.f32.xlu1 %v397_v17 }
  0xe8   : > { %404 = vmax.xlane.f32.xlu0 %v403_v19 }
 0x14d   : > { %v402_v20 = vpop.xlane.xlu1 %401 }
 0x14e   : > { %v410_v21 = vsub.f32 %v341_v12, %v402_v20 }
 0x150   : > { %v415_v22 = vmul.f32 1.442695, %v410_v21 }
 0x152   : > { %916 = vpow2.f32 %v415_v22 }
 0x153   : > { %v408_v23 = vpop.xlane.xlu0 %407 }
 0x154   : > { %v412_v24 = vsub.f32 %v393_v15, %v408_v23 }
 0x155   : > { %v399_v25 = vpop.xlane.xlu1 %398 }
 0x156   : > { %v419_v26 = vmul.f32 1.442695, %v412_v24  ;;  %v409_v27 = vsub.f32 %v315_v14, %v399_v25 }
 0x158   : > { %v917_v28 = vpop.eup %916  ;;  %918 = vpow2.f32 %v419_v26  ;;  %v413_v29 = vmul.f32 1.442695, %v409_v27 }
 0x159   : > { %v424_v30 = vsel %vm396_vm1, %v917_v28, 0.0 }
 0x15a   : > { %920 = vpow2.f32 %v413_v29  ;;  %425 = vadd.xlane.f32.xlu0 %v424_v30  ;;  %v1096_v29 = vmov 1983009808  }
 0x15b   : > { %v405_v31 = vpop.xlane.xlu0 %404  ;;  %v595_v30 = vunpack.c.l.s4 %v1096_v29 }
 0x15c   : > { %v411_v32 = vsub.f32 %v367_v18, %v405_v31 }
 0x15e   : > { %v1294_v33 = vpop.eup %918  ;;  %v417_v34 = vmul.f32 1.442695, %v411_v32 }
 0x15f   : > { %v430_v35 = vsel %vm396_vm1, %v1294_v33, 0.0 }
 0x160   : > { %v1298_v36 = vpop.eup %920  ;;  %922 = vpow2.f32 %v417_v34  ;;  %431 = vadd.xlane.f32.xlu2 %v430_v35  ;;  %v596_v34 = vunpack.c.0.s8 %v595_v30 }
 0x161   : > { %v421_v37 = vsel %vm396_vm1, %v1298_v36, 0.0 }
 0x162   : > { %422 = vadd.xlane.f32.xlu1 %v421_v37 }
 0x166   : > { %v1302_v38 = vpop.eup %922 }
 0x167   : > { %v427_v39 = vsel %vm396_vm1, %v1302_v38, 0.0 }
 0x168   : > { %428 = vadd.xlane.f32.xlu2 %v427_v39  ;;  %v1097_v39 = vmov 1934713408  }
 0x169   : > { %v619_v40 = vunpack.c.l.s4 %v1097_v39 }
 0x1cd   : > { %v426_v44 = vpop.xlane.xlu0 %425 }
 0x1ce   : > { %924 = vrcp.f32 %v426_v44  ;;  %v459_v50 = vand.u32 2147483648, %v426_v44  ;;  %v457_v52 = vand.u32 2147483647, %v426_v44  ;;  %vm453_vm3 = vweird.f32 %v426_v44 }
 0x1d0   : > { %v460_v58 = vor.u32 1.1754944e-38, %v459_v50  ;;  %vm458_vm5 = vcmp.eq.f32.partialorder %v457_v52, 8.507059e+37 }
 0x1d3   : > { %v432_v45 = vpop.xlane.xlu2 %431 }
 0x1d4   : > { %v925_v46 = vpop.eup %924  ;;  %926 = vrcp.f32 %v432_v45  ;;  %v487_v62 = vand.u32 2147483647, %v432_v45  ;;  %v489_v63 = vand.u32 2147483648, %v432_v45  ;;  %vm483_vm7 = vweird.f32 %v432_v45 }
 0x1d5   : > { %v449_v47 = vmul.f32 %v925_v46, %v426_v44  ;;  %v423_v48 = vpop.xlane.xlu1 %422  ;;  %vm454_vm2 = vweird.f32 %v925_v46 }
 0x1d6   : > { %928 = vrcp.f32 %v423_v48  ;;  %vm455_vm4 = vmor %vm453_vm3, %vm454_vm2  ;;  %v444_v4 = vand.u32 2147483648, %v423_v48  ;;  %v442_v7 = vand.u32 2147483647, %v423_v48  ;;  %vm488_vm10 = vcmp.eq.f32.partialorder %v487_v62, 8.507059e+37 }
 0x1d7   : > { %v450_v49 = vsub.f32 1.0, %v449_v47  ;;  %v490_v9 = vor.u32 1.1754944e-38, %v489_v63  ;;  %vm438_vm11 = vweird.f32 %v423_v48 }
 0x1d8   : > { %v445_v13 = vor.u32 1.1754944e-38, %v444_v4  ;;  %vm443_vm13 = vcmp.eq.f32.partialorder %v442_v7, 8.507059e+37 }
 0x1d9   : > { %v451_v51 = vmul.f32 %v925_v46, %v450_v49 }
 0x1da   : > { %v927_v53 = vpop.eup %926 }
 0x1db   : > { %v452_v54 = vadd.f32 %v925_v46, %v451_v51  ;;  %v479_v55 = vmul.f32 %v927_v53, %v432_v45  ;;  %v429_v56 = vpop.xlane.xlu2 %428  ;;  %vm484_vm6 = vweird.f32 %v927_v53 }
 0x1dc   : > { %v929_v57 = vpop.eup %928  ;;  %930 = vrcp.f32 %v429_v56  ;;  %vm485_vm9 = vmor %vm483_vm7, %vm484_vm6  ;;  %v474_v18 = vand.u32 2147483648, %v429_v56  ;;  %v472_v21 = vand.u32 2147483647, %v429_v56  ;;  %vm468_vm15 = vweird.f32 %v429_v56 }
 0x1dd   : > { %v480_v59 = vsub.f32 1.0, %v479_v55  ;;  %v434_v60 = vmul.f32 %v929_v57, %v423_v48  ;;  %v456_v61 = vsel %vm455_vm4, %v925_v46, %v452_v54  ;;  %vm439_vm8 = vweird.f32 %v929_v57 }
 0x1de   : > { %v461_v0 = vsel %vm458_vm5, %v460_v58, %v456_v61  ;;  %vm440_vm12 = vmor %vm438_vm11, %vm439_vm8  ;;  %v475_v24 = vor.u32 1.1754944e-38, %v474_v18  ;;  %vm473_vm3 = vcmp.eq.f32.partialorder %v472_v21, 8.507059e+37  ;;  %vm590_vm4 = vcmask 1047556  }
 0x1df   : > { %v481_v1 = vmul.f32 %v927_v53, %v480_v59  ;;  %v435_v2 = vsub.f32 1.0, %v434_v60  ;;  %v494_v3 = vmul.f32 %v917_v28, %v461_v0  ;;  %v620_v46 = vunpack.c.0.s8 %v619_v40 }
 0x1e0   : > { %vm673_vm5 = vcmask 785408   ;;  %vm681_vm6 = vcmask 1043456  }
 0x1e1   : > { %v482_v5 = vadd.f32 %v927_v53, %v481_v1  ;;  %v436_v6 = vmul.f32 %v929_v57, %v435_v2  ;;  %841 = vmatmul.msk.f32.vlgmr.msrb.gmra.mxu1 %vm396_vm1, %v494_v3 }
 0x1e2   : > { %v931_v8 = vpop.eup %930 }
 0x1e3   : > { %v437_v10 = vadd.f32 %v929_v57, %v436_v6  ;;  %v464_v11 = vmul.f32 %v931_v8, %v429_v56  ;;  %v486_v12 = vsel %vm485_vm9, %v927_v53, %v482_v5  ;;  %vm469_vm14 = vweird.f32 %v931_v8 }
 0x1e4   : > { %v491_v14 = vsel %vm488_vm10, %v490_v9, %v486_v12  ;;  %vm470_vm2 = vmor %vm468_vm15, %vm469_vm14 }
 0x1e5   : > { %v465_v15 = vsub.f32 1.0, %v464_v11  ;;  %v496_v16 = vmul.f32 %v1294_v33, %v491_v14  ;;  %v441_v17 = vsel %vm440_vm12, %v929_v57, %v437_v10 }
 0x1e6   : > { %v446_v19 = vsel %vm443_vm13, %v445_v13, %v441_v17 }
 0x1e7   : > { %v466_v20 = vmul.f32 %v931_v8, %v465_v15  ;;  %843 = vmatmul.msk.f32.vlgmr.msrb.gmra.mxu3 %vm396_vm1, %v496_v16  ;;  %v493_v22 = vmul.f32 %v1298_v36, %v446_v19 }
 0x1e9   : > { %v467_v23 = vadd.f32 %v931_v8, %v466_v20  ;;  %840 = vmatmul.msk.f32.vlgmr.msrb.gmra.mxu0 %vm396_vm1, %v493_v22 }
 0x1eb   : > { %v471_v25 = vsel %vm470_vm2, %v931_v8, %v467_v23 }
 0x1ec   : > { %v476_v26 = vsel %vm473_vm3, %v475_v24, %v471_v25 }
 0x1ed   : > { %v495_v27 = vmul.f32 %v1302_v38, %v476_v26 }
 0x1ef   : > { %842 = vmatmul.msk.f32.vlgmr.msrb.gmra.mxu2 %vm396_vm1, %v495_v27  ;;  %vm671_vm1 = vcmask 523264  }
 0x25e   : > { %v540_v28 = vpop.f32.mrf.mxu1 }
 0x25f   : > { %v604_v32 = vrot.slane %v540_v28, 4 }
 0x266   : > { %v517_v36 = vpop.f32.mrf.mxu0 }
 0x267   : > { %v592_v42 = vrot.slane %v517_v36, 4 }
 0x26a   : > { %v586_v31 = vpop.f32.mrf.mxu3 }
 0x26b   : > { %v602_v33 = vrot.slane %v586_v31, 4  ;;  %v605_v35 = vsel %vm590_vm4, %v586_v31, %v604_v32 }
 0x26c   : > { %v613_v41 = vperm.slane %v605_v35, %v596_v34 }
 0x26d   : > { %v603_v37 = vsel %vm590_vm4, %v602_v33, %v540_v28 }
 0x26e   : > { %v609_v38 = vperm.slane %v603_v37, %v596_v34  ;;  %v626_v47 = vrot.slane %v613_v41, 4 }
 0x270   : > { %v614_v50 = vrot.slane %v609_v38, 4 }
 0x272   : > { %v563_v43 = vpop.f32.mrf.mxu2 }
 0x273   : > { %v589_v44 = vrot.slane %v563_v43, 4  ;;  %v593_v45 = vsel %vm590_vm4, %v563_v43, %v592_v42 }
 0x274   : > { %v601_v48 = vperm.slane %v593_v45, %v596_v34 }
 0x275   : > { %v591_v49 = vsel %vm590_vm4, %v589_v44, %v517_v36 }
 0x276   : > { %v597_v51 = vperm.slane %v591_v49, %v596_v34  ;;  %v628_v52 = vrot.slane %v601_v48, 4  ;;  %v627_v53 = vsel %vm590_vm4, %v626_v47, %v601_v48 }
 0x277   : > { %v633_v54 = vperm.slane %v627_v53, %v620_v46 }
 0x278   : > { %v629_v55 = vsel %vm590_vm4, %v613_v41, %v628_v52  ;;  %v615_v56 = vsel %vm590_vm4, %v614_v50, %v597_v51  ;;  %v616_v60 = vrot.slane %v597_v51, 4 }
 0x279   : > { %v637_v57 = vperm.slane %v629_v55, %v620_v46  ;;  %v642_v58 = vrot.slane %v633_v54, 4  ;;  %v621_v59 = vperm.slane %v615_v56, %v620_v46 }
 0x27a   : > { %v617_v0 = vsel %vm590_vm4, %v609_v38, %v616_v60 }
 0x27b   : > { %663 = vrot.lane.b32.xlu0 %v637_v57, %s1098_s17  ;;  %v643_v61 = vsel %vm590_vm4, 0.0, %v642_v58  ;;  %v638_v62 = vrot.slane %v621_v59, 4  ;;  %v644_v1 = vrot.slane %v637_v57, 4  ;;  %v625_v2 = vperm.slane %v617_v0, %v620_v46 }
 0x27c   : > { %659 = vrot.lane.b32.xlu2 %v643_v61, %s1099_s25 }
 0x27d   : > { %v639_v63 = vsel %vm590_vm4, 0.0, %v638_v62  ;;  %v645_v3 = vsel %vm590_vm4, 0.0, %v644_v1  ;;  %v640_v4 = vrot.slane %v625_v2, 4 }
 0x27e   : > { %647 = vrot.lane.b32.xlu1 %v639_v63, %s1099_s25 }
 0x27f   : > { %v641_v5 = vsel %vm590_vm4, 0.0, %v640_v4 }
 0x283   : > { %651 = vrot.lane.b32.xlu0 %v625_v2, %s1098_s17 }
 0x284   : > { %667 = vrot.lane.b32.xlu2 %v645_v3, %s1100_s20 }
 0x28c   : > { %655 = vrot.lane.b32.xlu2 %v641_v5, %s1100_s20 }
 0x2d6   : > { %v660_v6 = vpop.permute.xlu2 %659 }
 0x2d7   : > { %v675_v9 = vsel %vm291_vm0, %v633_v54, %v660_v6 }
 0x2de   : > { %v668_v7 = vpop.permute.xlu2 %667 }
 0x2e6   : > { %v656_v15 = vpop.permute.xlu2 %655 }
 0x2ed   : > { %v664_v8 = vpop.permute.xlu0 %663 }
 0x2ee   : > { %v676_v10 = vsel %vm671_vm1, %v675_v9, %v664_v8 }
 0x2ef   : > { %v677_v12 = vsel %vm673_vm5, %v676_v10, %v668_v7 }
 0x2f0   : > { %v648_v11 = vpop.permute.xlu1 %647  ;;  %v680_v16 = vrot.slane %v677_v12, 4 }
 0x2f1   : > { %v670_v13 = vsel %vm291_vm0, %v621_v59, %v648_v11 }
 0x2f5   : > { %v652_v14 = vpop.permute.xlu0 %651 }
 0x2f6   : > { %v672_v17 = vsel %vm671_vm1, %v670_v13, %v652_v14 }
 0x2f7   : > { %v674_v18 = vsel %vm673_vm5, %v672_v17, %v656_v15 }
 0x2f8   : > { %v682_v19 = vsel %vm681_vm6, %v674_v18, %v680_v16 }
 0x2f9   : > { %684 = vst [vmem:[%s271_s10] sm:$0xff] %v682_v19 }
 0x2fa   : > { %1049 = shalt.err (!%p1046_p7)
}
 0x2fb   : > { %859 = dma.vmem_to_hbm [thread:$0]  (%p1167_p11), %s700_s11, 128, %s702_s19, %s686_s16  }
 0x2fc PF: > { %s713_s0 = sand.u32 1, %s1080_s12   ;;  %p872_p0 = pnand %p817_p9, %p1171_p12 }
 0x2fd   : > { %s714_s5 = scalar_lea.sflag [#allocation4], %s713_s0 }
 0x2fe   : > { %p873_p8 = pneg %p872_p0 }
 0x300   : > { %1075 = dma.done.wait (%p873_p8), %s714_s5, 128  }
 0x301   : > { %1077 = vsyncadd (%p873_p8), %s714_s5, 4294967168  ;;  %s1381_s22 = sld [smem:[#allocation12_spill]]  ;;  %p19_p10 = scmp.ge.s32.totalorder %s1146_s18, 4  }
 0x302   : > { %s1382_s12 = smov %s1084_s13  ;;  %s1383_s13 = smov %s1088_s14 }
 0x303   : > { %s1385_s15 = smov %s1146_s18  ;;  %21 = sbr.rel (!%p19_p10) target bundleno = 10 (0xa), region = 101 }
 0x307   : > { %s1384_s14 = smov %s1381_s22 }
 0x308   :  { %720 = vsyncpa [#allocation3], 1 }
 0x309   :  { %722 = vsyncpa [#allocation3 + $0x1], 1 }
 0x30a   :  { %723 = vsyncpa [#allocation6], 1 }
 0x30b   :  { %725 = vsyncpa [#allocation6 + $0x1], 1 }
 0x30c   :  { %726 = vsyncpa [#allocation4], 1 }
 0x30d   :  { %728 = vsyncpa [#allocation4 + $0x1], 1 }

</bundles_post_ra>
